<compile_context>
chip_gen: v7x
topology: tpu7x:2x2x1
jax: 0.10.0
libtpu: 0.0.40
codegen_flags: <defaults>
</compile_context>

<pallas_src>
import jax
import jax.numpy as jnp
import numpy as np
from jax.experimental import pallas as pl
from jax.experimental.pallas import tpu as pltpu

N_CATEGORIES = 0            # len(all_categories) in the source script
INPUT_SIZE = 16
HIDDEN_SIZE = 32
OUTPUT_SIZE = 16
BATCH = 16
SEQ_LEN = 8

F_IN = N_CATEGORIES + INPUT_SIZE + HIDDEN_SIZE       # 48
NH_NO = HIDDEN_SIZE + OUTPUT_SIZE                    # 48


def _num_batch_groups() -> int:
    """One grid program per TensorCore: 2 batch groups on v7x, else 1."""
    try:
        kind = jax.devices()[0].device_kind.lower()
    except Exception:
        return 1
    return 2 if ("v7" in kind or "7x" in kind) else 1


def _make_kernel(seq_len: int, batch_tile: int):
    def rnn_seq_kernel(x_ref,     # (T*Bt, ni)   all timesteps of this group
                       h0_ref,    # (Bt, nh)     initial hidden for this group
                       wx_ref,    # (ni, nh+no)  input rows of fused [W_i2h | W_logits]
                       wh_ref,    # (nh, nh+no)  hidden rows of fused weight
                       b_ref,     # (1, nh+no)   fused [b_i2h | b_logits]
                       out_ref,   # (Bt, T*no)   lane-dense log-softmax slab
                       hfin_ref): # (Bt, nh)     final hidden state
        # Loop-invariant work hoisted out of the recurrence: one batched MXU
        # pass produces every timestep's x-contribution, bias broadcast once.
        xw = (jnp.dot(x_ref[...], wx_ref[...],
                      preferred_element_type=jnp.float32)
              + b_ref[...])                               # (T*Bt, nh+no)
        wh = wh_ref[...]
        h = h0_ref[...]

        for t in range(seq_len):                          # fully unrolled, static
            # [hidden | logits] for step t; W_o2o already folded into wh/wx/b.
            ho = (xw[t * batch_tile:(t + 1) * batch_tile, :]
                  + jnp.dot(h, wh, preferred_element_type=jnp.float32))

            # TODO(synk): nn.Dropout(0.1) is identity here (eval semantics);
            # training-mode stochastic masking cannot match torch RNG.

            # LogSoftmax(dim=1), numerically stable, f32.
            logits = ho[:, HIDDEN_SIZE:]
            m = jnp.max(logits, axis=1, keepdims=True)
            shifted = logits - m
            lse = jnp.log(jnp.sum(jnp.exp(shifted), axis=1, keepdims=True))
            out_ref[:, t * OUTPUT_SIZE:(t + 1) * OUTPUT_SIZE] = shifted - lse

            h = ho[:, :HIDDEN_SIZE]

        hfin_ref[...] = h

    return rnn_seq_kernel


def rnn_forward_sequence(category_seq, input_seq, h0, packed_params,
                         num_groups=None):
    """Fused recurrence over T steps.

    Returns (log-softmax outputs of shape (T, B, OUTPUT_SIZE),
             final hidden of shape (B, HIDDEN_SIZE))."""
    wx, wh, b_big = packed_params
    T, B, _ = input_seq.shape
    assert N_CATEGORIES == 0 and category_seq.shape == (T, B, N_CATEGORIES), (
        "n_categories == 0 in the source module; zero-width concat is a no-op")

    G = _num_batch_groups() if num_groups is None else num_groups
    if B % G != 0:
        G = 1
    Bt = B // G
    assert Bt % 8 == 0, "batch tile must fill full sublanes"

    # (T, B, ni) -> (G, T*Bt, ni): one slab per batch group, fetched by a
    # single DMA and consumed by a single batched x-projection in the kernel.
    x_g = (input_seq.reshape(T, G, Bt, INPUT_SIZE)
           .transpose(1, 0, 2, 3)
           .reshape(G, T * Bt, INPUT_SIZE))

    kernel = _make_kernel(T, Bt)

    out_slab, h_final = pl.pallas_call(
        kernel,
        out_shape=(
            jax.ShapeDtypeStruct((B, T * OUTPUT_SIZE), jnp.float32),
            jax.ShapeDtypeStruct((B, HIDDEN_SIZE), jnp.float32),
        ),
        grid_spec=pltpu.PrefetchScalarGridSpec(
            num_scalar_prefetch=0,
            grid=(G,),
            in_specs=[
                pl.BlockSpec((None, T * Bt, INPUT_SIZE), lambda g: (g, 0, 0)),
                pl.BlockSpec((Bt, HIDDEN_SIZE), lambda g: (g, 0)),
                pl.BlockSpec((INPUT_SIZE, NH_NO), lambda g: (0, 0)),
                pl.BlockSpec((HIDDEN_SIZE, NH_NO), lambda g: (0, 0)),
                pl.BlockSpec((1, NH_NO), lambda g: (0, 0)),
            ],
            out_specs=(
                pl.BlockSpec((Bt, T * OUTPUT_SIZE), lambda g: (g, 0)),
                pl.BlockSpec((Bt, HIDDEN_SIZE), lambda g: (g, 0)),
            ),
        ),
        compiler_params=pltpu.CompilerParams(
            dimension_semantics=("parallel",)),
    )(x_g, h0, wx, wh, b_big)

    # Lane-dense slab -> (T, B, no) expected layout (cheap XLA reshape/transpose).
    out = out_slab.reshape(B, T, OUTPUT_SIZE).transpose(1, 0, 2)
    return out, h_final


def init_params(key):
    """PyTorch-Linear-style init, weights stored as (in_features, out_features)."""
    ks = jax.random.split(key, 6)

    def lin(kw, kb, fan_in, fan_out):
        bound = 1.0 / np.sqrt(fan_in)
        w = jax.random.uniform(kw, (fan_in, fan_out), jnp.float32, -bound, bound)
        b = jax.random.uniform(kb, (1, fan_out), jnp.float32, -bound, bound)
        return w, b

    w_i2h, b_i2h = lin(ks[0], ks[1], F_IN, HIDDEN_SIZE)
    w_i2o, b_i2o = lin(ks[2], ks[3], F_IN, OUTPUT_SIZE)
    w_o2o, b_o2o = lin(ks[4], ks[5], HIDDEN_SIZE + OUTPUT_SIZE, OUTPUT_SIZE)
    return (w_i2h, b_i2h, w_i2o, b_i2o, w_o2o, b_o2o)


def pack_params(params):
    """Pre-fuse o2o into the first projection so one dot yields [hidden | logits].

    logits = cat(hidden, i2o_out) @ W_o2o + b_o2o
           = combined @ (W_i2h @ W_o2o[:H] + W_i2o @ W_o2o[H:])
             + (b_i2h @ W_o2o[:H] + b_i2o @ W_o2o[H:] + b_o2o)
    """
    (w_i2h, b_i2h, w_i2o, b_i2o, w_o2o, b_o2o) = params
    hp = jax.lax.Precision.HIGHEST
    w_o2o_h = w_o2o[:HIDDEN_SIZE, :]               # (nh, no)
    w_o2o_o = w_o2o[HIDDEN_SIZE:, :]               # (no, no)
    w_logits = (jnp.dot(w_i2h, w_o2o_h, precision=hp)
                + jnp.dot(w_i2o, w_o2o_o, precision=hp))          # (F_IN, no)
    b_logits = (jnp.dot(b_i2h, w_o2o_h, precision=hp)
                + jnp.dot(b_i2o, w_o2o_o, precision=hp) + b_o2o)  # (1, no)

    w_big = jnp.concatenate([w_i2h, w_logits], axis=1)   # (48, 48)
    b_big = jnp.concatenate([b_i2h, b_logits], axis=1)   # (1, 48)
    wx = w_big[:INPUT_SIZE, :]                            # input rows   (16, 48)
    wh = w_big[INPUT_SIZE:, :]                            # hidden rows  (32, 48)
    return (wx, wh, b_big)


def rnn_forward_ref(category_seq, input_seq, h0, params):
    """Plain-JAX reference, faithful to the torch per-step forward()."""
    (w_i2h, b_i2h, w_i2o, b_i2o, w_o2o, b_o2o) = params
    hp = jax.lax.Precision.HIGHEST
    h = h0
    outs = []
    for t in range(input_seq.shape[0]):
        combined = jnp.concatenate([category_seq[t], input_seq[t], h], axis=1)
        hidden = jnp.dot(combined, w_i2h, precision=hp) + b_i2h
        output = jnp.dot(combined, w_i2o, precision=hp) + b_i2o
        output_combined = jnp.concatenate([hidden, output], axis=1)
        output = jnp.dot(output_combined, w_o2o, precision=hp) + b_o2o
        outs.append(jax.nn.log_softmax(output, axis=1))   # dropout = identity (eval)
        h = hidden
    return jnp.stack(outs, axis=0), h


if __name__ == "__main__":
    key = jax.random.PRNGKey(0)
    k_par, k_in, k_hid = jax.random.split(key, 3)

    params = init_params(k_par)
    packed = pack_params(params)

    category_seq = jnp.zeros((SEQ_LEN, BATCH, N_CATEGORIES), jnp.float32)
    input_seq = jax.random.normal(k_in, (SEQ_LEN, BATCH, INPUT_SIZE), jnp.float32)
    h0 = jax.random.normal(k_hid, (BATCH, HIDDEN_SIZE), jnp.float32)

    out, h_final = rnn_forward_sequence(category_seq, input_seq, h0, packed)
    jax.block_until_ready((out, h_final))

    out_ref, h_ref = rnn_forward_ref(category_seq, input_seq, h0, params)
    np.testing.assert_allclose(np.asarray(out), np.asarray(out_ref),
                               rtol=5e-4, atol=5e-4)
    np.testing.assert_allclose(np.asarray(h_final), np.asarray(h_ref),
                               rtol=5e-4, atol=5e-4)
    print("KERNEL_OK")
</pallas_src>

<mosaic_0001>
module attributes {stable_mosaic.version = 11 : i64} {
  func.func @rnn_seq_kernel(%arg0: i32, %arg1: memref<1x128x16xf32, #tpu.memory_space<vmem>>, %arg2: memref<16x32xf32, #tpu.memory_space<vmem>>, %arg3: memref<16x48xf32, #tpu.memory_space<vmem>>, %arg4: memref<32x48xf32, #tpu.memory_space<vmem>>, %arg5: memref<1x48xf32, #tpu.memory_space<vmem>>, %arg6: memref<16x128xf32, #tpu.memory_space<vmem>>, %arg7: memref<16x32xf32, #tpu.memory_space<vmem>>) attributes {dimension_semantics = [#tpu.dimension_semantics<parallel>], iteration_bounds = array<i64: 1>, scalar_prefetch = 0 : i64, scratch_operands = 0 : i64, tpu.core_type = #tpu.core_type<tc>, window_params = [{transform_indices = @transform_0, window_bounds = array<i64: 1, 128, 16>}, {transform_indices = @transform_1, window_bounds = array<i64: 16, 32>}, {pipeline_mode = #tpu.pipeline_mode<synchronous>, transform_indices = @transform_2, window_bounds = array<i64: 16, 48>}, {pipeline_mode = #tpu.pipeline_mode<synchronous>, transform_indices = @transform_3, window_bounds = array<i64: 32, 48>}, {pipeline_mode = #tpu.pipeline_mode<synchronous>, transform_indices = @transform_4, window_bounds = array<i64: 1, 48>}, {transform_indices = @transform_5, window_bounds = array<i64: 16, 128>}, {transform_indices = @transform_6, window_bounds = array<i64: 16, 32>}]} {
    %c0 = arith.constant 0 : index
    %c0_0 = arith.constant 0 : index
    %c0_1 = arith.constant 0 : index
    %0 = vector.load %arg1[%c0, %c0_0, %c0_1] : memref<1x128x16xf32, #tpu.memory_space<vmem>>, vector<1x128x16xf32>
    %1 = vector.shape_cast %0 : vector<1x128x16xf32> to vector<128x16xf32>
    %c0_2 = arith.constant 0 : index
    %c0_3 = arith.constant 0 : index
    %2 = vector.load %arg3[%c0_2, %c0_3] : memref<16x48xf32, #tpu.memory_space<vmem>>, vector<16x48xf32>
    %cst = arith.constant dense<0.000000e+00> : vector<128x48xf32>
    %3 = tpu.matmul %1, %2, %cst {dimension_numbers = #tpu.dot_dimension_numbers<[1], [0], [0], [1], [0, 0, 1, 1], [], []>} : vector<128x16xf32>, vector<16x48xf32>, vector<128x48xf32> -> vector<128x48xf32>
    %c0_4 = arith.constant 0 : index
    %c0_5 = arith.constant 0 : index
    %4 = vector.load %arg5[%c0_4, %c0_5] : memref<1x48xf32, #tpu.memory_space<vmem>>, vector<1x48xf32>
    %5 = vector.broadcast %4 : vector<1x48xf32> to vector<128x48xf32>
    %6 = arith.addf %3, %5 : vector<128x48xf32>
    %c0_6 = arith.constant 0 : index
    %c0_7 = arith.constant 0 : index
    %7 = vector.load %arg4[%c0_6, %c0_7] : memref<32x48xf32, #tpu.memory_space<vmem>>, vector<32x48xf32>
    %c0_8 = arith.constant 0 : index
    %c0_9 = arith.constant 0 : index
    %8 = vector.load %arg2[%c0_8, %c0_9] : memref<16x32xf32, #tpu.memory_space<vmem>>, vector<16x32xf32>
    %9 = vector.extract_strided_slice %6 {offsets = [0, 0], sizes = [16, 48], strides = [1, 1]} : vector<128x48xf32> to vector<16x48xf32>
    %cst_10 = arith.constant dense<0.000000e+00> : vector<16x48xf32>
    %10 = tpu.matmul %8, %7, %cst_10 {dimension_numbers = #tpu.dot_dimension_numbers<[1], [0], [0], [1], [0, 0, 1, 1], [], []>} : vector<16x32xf32>, vector<32x48xf32>, vector<16x48xf32> -> vector<16x48xf32>
    %11 = arith.addf %9, %10 : vector<16x48xf32>
    %12 = vector.extract_strided_slice %11 {offsets = [0, 32], sizes = [16, 16], strides = [1, 1]} : vector<16x48xf32> to vector<16x16xf32>
    %cst_11 = arith.constant dense<0xFF800000> : vector<16xf32>
    %13 = vector.multi_reduction <maximumf>, %12, %cst_11 [1] : vector<16x16xf32> to vector<16xf32>
    %14 = vector.shape_cast %13 : vector<16xf32> to vector<16x1xf32>
    %15 = vector.broadcast %14 : vector<16x1xf32> to vector<16x16xf32>
    %16 = arith.subf %12, %15 : vector<16x16xf32>
    %17 = math.exp %16 : vector<16x16xf32>
    %cst_12 = arith.constant dense<0.000000e+00> : vector<16xf32>
    %18 = vector.multi_reduction <add>, %17, %cst_12 [1] : vector<16x16xf32> to vector<16xf32>
    %19 = vector.shape_cast %18 : vector<16xf32> to vector<16x1xf32>
    %20 = math.log %19 : vector<16x1xf32>
    %21 = vector.broadcast %20 : vector<16x1xf32> to vector<16x16xf32>
    %22 = arith.subf %16, %21 : vector<16x16xf32>
    %c0_13 = arith.constant 0 : index
    %c0_14 = arith.constant 0 : index
    %23 = vector.load %arg6[%c0_13, %c0_14] : memref<16x128xf32, #tpu.memory_space<vmem>>, vector<16x16xf32>
    tpu.vector_store %arg6[%c0_13, %c0_14], %22 {strides = array<i32>} : memref<16x128xf32, #tpu.memory_space<vmem>>, vector<16x16xf32>,
    %24 = vector.extract_strided_slice %11 {offsets = [0, 0], sizes = [16, 32], strides = [1, 1]} : vector<16x48xf32> to vector<16x32xf32>
    %25 = vector.extract_strided_slice %6 {offsets = [16, 0], sizes = [16, 48], strides = [1, 1]} : vector<128x48xf32> to vector<16x48xf32>
    %cst_15 = arith.constant dense<0.000000e+00> : vector<16x48xf32>
    %26 = tpu.matmul %24, %7, %cst_15 {dimension_numbers = #tpu.dot_dimension_numbers<[1], [0], [0], [1], [0, 0, 1, 1], [], []>} : vector<16x32xf32>, vector<32x48xf32>, vector<16x48xf32> -> vector<16x48xf32>
    %27 = arith.addf %25, %26 : vector<16x48xf32>
    %28 = vector.extract_strided_slice %27 {offsets = [0, 32], sizes = [16, 16], strides = [1, 1]} : vector<16x48xf32> to vector<16x16xf32>
    %cst_16 = arith.constant dense<0xFF800000> : vector<16xf32>
    %29 = vector.multi_reduction <maximumf>, %28, %cst_16 [1] : vector<16x16xf32> to vector<16xf32>
    %30 = vector.shape_cast %29 : vector<16xf32> to vector<16x1xf32>
    %31 = vector.broadcast %30 : vector<16x1xf32> to vector<16x16xf32>
    %32 = arith.subf %28, %31 : vector<16x16xf32>
    %33 = math.exp %32 : vector<16x16xf32>
    %cst_17 = arith.constant dense<0.000000e+00> : vector<16xf32>
    %34 = vector.multi_reduction <add>, %33, %cst_17 [1] : vector<16x16xf32> to vector<16xf32>
    %35 = vector.shape_cast %34 : vector<16xf32> to vector<16x1xf32>
    %36 = math.log %35 : vector<16x1xf32>
    %37 = vector.broadcast %36 : vector<16x1xf32> to vector<16x16xf32>
    %38 = arith.subf %32, %37 : vector<16x16xf32>
    %c0_18 = arith.constant 0 : index
    %c16 = arith.constant 16 : index
    %39 = vector.load %arg6[%c0_18, %c16] : memref<16x128xf32, #tpu.memory_space<vmem>>, vector<16x16xf32>
    tpu.vector_store %arg6[%c0_18, %c16], %38 {strides = array<i32>} : memref<16x128xf32, #tpu.memory_space<vmem>>, vector<16x16xf32>,
    %40 = vector.extract_strided_slice %27 {offsets = [0, 0], sizes = [16, 32], strides = [1, 1]} : vector<16x48xf32> to vector<16x32xf32>
    %41 = vector.extract_strided_slice %6 {offsets = [32, 0], sizes = [16, 48], strides = [1, 1]} : vector<128x48xf32> to vector<16x48xf32>
    %cst_19 = arith.constant dense<0.000000e+00> : vector<16x48xf32>
    %42 = tpu.matmul %40, %7, %cst_19 {dimension_numbers = #tpu.dot_dimension_numbers<[1], [0], [0], [1], [0, 0, 1, 1], [], []>} : vector<16x32xf32>, vector<32x48xf32>, vector<16x48xf32> -> vector<16x48xf32>
    %43 = arith.addf %41, %42 : vector<16x48xf32>
    %44 = vector.extract_strided_slice %43 {offsets = [0, 32], sizes = [16, 16], strides = [1, 1]} : vector<16x48xf32> to vector<16x16xf32>
    %cst_20 = arith.constant dense<0xFF800000> : vector<16xf32>
    %45 = vector.multi_reduction <maximumf>, %44, %cst_20 [1] : vector<16x16xf32> to vector<16xf32>
    %46 = vector.shape_cast %45 : vector<16xf32> to vector<16x1xf32>
    %47 = vector.broadcast %46 : vector<16x1xf32> to vector<16x16xf32>
    %48 = arith.subf %44, %47 : vector<16x16xf32>
    %49 = math.exp %48 : vector<16x16xf32>
    %cst_21 = arith.constant dense<0.000000e+00> : vector<16xf32>
    %50 = vector.multi_reduction <add>, %49, %cst_21 [1] : vector<16x16xf32> to vector<16xf32>
    %51 = vector.shape_cast %50 : vector<16xf32> to vector<16x1xf32>
    %52 = math.log %51 : vector<16x1xf32>
    %53 = vector.broadcast %52 : vector<16x1xf32> to vector<16x16xf32>
    %54 = arith.subf %48, %53 : vector<16x16xf32>
    %c0_22 = arith.constant 0 : index
    %c32 = arith.constant 32 : index
    %55 = vector.load %arg6[%c0_22, %c32] : memref<16x128xf32, #tpu.memory_space<vmem>>, vector<16x16xf32>
    tpu.vector_store %arg6[%c0_22, %c32], %54 {strides = array<i32>} : memref<16x128xf32, #tpu.memory_space<vmem>>, vector<16x16xf32>,
    %56 = vector.extract_strided_slice %43 {offsets = [0, 0], sizes = [16, 32], strides = [1, 1]} : vector<16x48xf32> to vector<16x32xf32>
    %57 = vector.extract_strided_slice %6 {offsets = [48, 0], sizes = [16, 48], strides = [1, 1]} : vector<128x48xf32> to vector<16x48xf32>
    %cst_23 = arith.constant dense<0.000000e+00> : vector<16x48xf32>
    %58 = tpu.matmul %56, %7, %cst_23 {dimension_numbers = #tpu.dot_dimension_numbers<[1], [0], [0], [1], [0, 0, 1, 1], [], []>} : vector<16x32xf32>, vector<32x48xf32>, vector<16x48xf32> -> vector<16x48xf32>
    %59 = arith.addf %57, %58 : vector<16x48xf32>
    %60 = vector.extract_strided_slice %59 {offsets = [0, 32], sizes = [16, 16], strides = [1, 1]} : vector<16x48xf32> to vector<16x16xf32>
    %cst_24 = arith.constant dense<0xFF800000> : vector<16xf32>
    %61 = vector.multi_reduction <maximumf>, %60, %cst_24 [1] : vector<16x16xf32> to vector<16xf32>
    %62 = vector.shape_cast %61 : vector<16xf32> to vector<16x1xf32>
    %63 = vector.broadcast %62 : vector<16x1xf32> to vector<16x16xf32>
    %64 = arith.subf %60, %63 : vector<16x16xf32>
    %65 = math.exp %64 : vector<16x16xf32>
    %cst_25 = arith.constant dense<0.000000e+00> : vector<16xf32>
    %66 = vector.multi_reduction <add>, %65, %cst_25 [1] : vector<16x16xf32> to vector<16xf32>
    %67 = vector.shape_cast %66 : vector<16xf32> to vector<16x1xf32>
    %68 = math.log %67 : vector<16x1xf32>
    %69 = vector.broadcast %68 : vector<16x1xf32> to vector<16x16xf32>
    %70 = arith.subf %64, %69 : vector<16x16xf32>
    %c0_26 = arith.constant 0 : index
    %c48 = arith.constant 48 : index
    %71 = vector.load %arg6[%c0_26, %c48] : memref<16x128xf32, #tpu.memory_space<vmem>>, vector<16x16xf32>
    tpu.vector_store %arg6[%c0_26, %c48], %70 {strides = array<i32>} : memref<16x128xf32, #tpu.memory_space<vmem>>, vector<16x16xf32>,
    %72 = vector.extract_strided_slice %59 {offsets = [0, 0], sizes = [16, 32], strides = [1, 1]} : vector<16x48xf32> to vector<16x32xf32>
    %73 = vector.extract_strided_slice %6 {offsets = [64, 0], sizes = [16, 48], strides = [1, 1]} : vector<128x48xf32> to vector<16x48xf32>
    %cst_27 = arith.constant dense<0.000000e+00> : vector<16x48xf32>
    %74 = tpu.matmul %72, %7, %cst_27 {dimension_numbers = #tpu.dot_dimension_numbers<[1], [0], [0], [1], [0, 0, 1, 1], [], []>} : vector<16x32xf32>, vector<32x48xf32>, vector<16x48xf32> -> vector<16x48xf32>
    %75 = arith.addf %73, %74 : vector<16x48xf32>
    %76 = vector.extract_strided_slice %75 {offsets = [0, 32], sizes = [16, 16], strides = [1, 1]} : vector<16x48xf32> to vector<16x16xf32>
    %cst_28 = arith.constant dense<0xFF800000> : vector<16xf32>
    %77 = vector.multi_reduction <maximumf>, %76, %cst_28 [1] : vector<16x16xf32> to vector<16xf32>
    %78 = vector.shape_cast %77 : vector<16xf32> to vector<16x1xf32>
    %79 = vector.broadcast %78 : vector<16x1xf32> to vector<16x16xf32>
    %80 = arith.subf %76, %79 : vector<16x16xf32>
    %81 = math.exp %80 : vector<16x16xf32>
    %cst_29 = arith.constant dense<0.000000e+00> : vector<16xf32>
    %82 = vector.multi_reduction <add>, %81, %cst_29 [1] : vector<16x16xf32> to vector<16xf32>
    %83 = vector.shape_cast %82 : vector<16xf32> to vector<16x1xf32>
    %84 = math.log %83 : vector<16x1xf32>
    %85 = vector.broadcast %84 : vector<16x1xf32> to vector<16x16xf32>
    %86 = arith.subf %80, %85 : vector<16x16xf32>
    %c0_30 = arith.constant 0 : index
    %c64 = arith.constant 64 : index
    %87 = vector.load %arg6[%c0_30, %c64] : memref<16x128xf32, #tpu.memory_space<vmem>>, vector<16x16xf32>
    tpu.vector_store %arg6[%c0_30, %c64], %86 {strides = array<i32>} : memref<16x128xf32, #tpu.memory_space<vmem>>, vector<16x16xf32>,
    %88 = vector.extract_strided_slice %75 {offsets = [0, 0], sizes = [16, 32], strides = [1, 1]} : vector<16x48xf32> to vector<16x32xf32>
    %89 = vector.extract_strided_slice %6 {offsets = [80, 0], sizes = [16, 48], strides = [1, 1]} : vector<128x48xf32> to vector<16x48xf32>
    %cst_31 = arith.constant dense<0.000000e+00> : vector<16x48xf32>
    %90 = tpu.matmul %88, %7, %cst_31 {dimension_numbers = #tpu.dot_dimension_numbers<[1], [0], [0], [1], [0, 0, 1, 1], [], []>} : vector<16x32xf32>, vector<32x48xf32>, vector<16x48xf32> -> vector<16x48xf32>
    %91 = arith.addf %89, %90 : vector<16x48xf32>
    %92 = vector.extract_strided_slice %91 {offsets = [0, 32], sizes = [16, 16], strides = [1, 1]} : vector<16x48xf32> to vector<16x16xf32>
    %cst_32 = arith.constant dense<0xFF800000> : vector<16xf32>
    %93 = vector.multi_reduction <maximumf>, %92, %cst_32 [1] : vector<16x16xf32> to vector<16xf32>
    %94 = vector.shape_cast %93 : vector<16xf32> to vector<16x1xf32>
    %95 = vector.broadcast %94 : vector<16x1xf32> to vector<16x16xf32>
    %96 = arith.subf %92, %95 : vector<16x16xf32>
    %97 = math.exp %96 : vector<16x16xf32>
    %cst_33 = arith.constant dense<0.000000e+00> : vector<16xf32>
    %98 = vector.multi_reduction <add>, %97, %cst_33 [1] : vector<16x16xf32> to vector<16xf32>
    %99 = vector.shape_cast %98 : vector<16xf32> to vector<16x1xf32>
    %100 = math.log %99 : vector<16x1xf32>
    %101 = vector.broadcast %100 : vector<16x1xf32> to vector<16x16xf32>
    %102 = arith.subf %96, %101 : vector<16x16xf32>
    %c0_34 = arith.constant 0 : index
    %c80 = arith.constant 80 : index
    %103 = vector.load %arg6[%c0_34, %c80] : memref<16x128xf32, #tpu.memory_space<vmem>>, vector<16x16xf32>
    tpu.vector_store %arg6[%c0_34, %c80], %102 {strides = array<i32>} : memref<16x128xf32, #tpu.memory_space<vmem>>, vector<16x16xf32>,
    %104 = vector.extract_strided_slice %91 {offsets = [0, 0], sizes = [16, 32], strides = [1, 1]} : vector<16x48xf32> to vector<16x32xf32>
    %105 = vector.extract_strided_slice %6 {offsets = [96, 0], sizes = [16, 48], strides = [1, 1]} : vector<128x48xf32> to vector<16x48xf32>
    %cst_35 = arith.constant dense<0.000000e+00> : vector<16x48xf32>
    %106 = tpu.matmul %104, %7, %cst_35 {dimension_numbers = #tpu.dot_dimension_numbers<[1], [0], [0], [1], [0, 0, 1, 1], [], []>} : vector<16x32xf32>, vector<32x48xf32>, vector<16x48xf32> -> vector<16x48xf32>
    %107 = arith.addf %105, %106 : vector<16x48xf32>
    %108 = vector.extract_strided_slice %107 {offsets = [0, 32], sizes = [16, 16], strides = [1, 1]} : vector<16x48xf32> to vector<16x16xf32>
    %cst_36 = arith.constant dense<0xFF800000> : vector<16xf32>
    %109 = vector.multi_reduction <maximumf>, %108, %cst_36 [1] : vector<16x16xf32> to vector<16xf32>
    %110 = vector.shape_cast %109 : vector<16xf32> to vector<16x1xf32>
    %111 = vector.broadcast %110 : vector<16x1xf32> to vector<16x16xf32>
    %112 = arith.subf %108, %111 : vector<16x16xf32>
    %113 = math.exp %112 : vector<16x16xf32>
    %cst_37 = arith.constant dense<0.000000e+00> : vector<16xf32>
    %114 = vector.multi_reduction <add>, %113, %cst_37 [1] : vector<16x16xf32> to vector<16xf32>
    %115 = vector.shape_cast %114 : vector<16xf32> to vector<16x1xf32>
    %116 = math.log %115 : vector<16x1xf32>
    %117 = vector.broadcast %116 : vector<16x1xf32> to vector<16x16xf32>
    %118 = arith.subf %112, %117 : vector<16x16xf32>
    %c0_38 = arith.constant 0 : index
    %c96 = arith.constant 96 : index
    %119 = vector.load %arg6[%c0_38, %c96] : memref<16x128xf32, #tpu.memory_space<vmem>>, vector<16x16xf32>
    tpu.vector_store %arg6[%c0_38, %c96], %118 {strides = array<i32>} : memref<16x128xf32, #tpu.memory_space<vmem>>, vector<16x16xf32>,
    %120 = vector.extract_strided_slice %107 {offsets = [0, 0], sizes = [16, 32], strides = [1, 1]} : vector<16x48xf32> to vector<16x32xf32>
    %121 = vector.extract_strided_slice %6 {offsets = [112, 0], sizes = [16, 48], strides = [1, 1]} : vector<128x48xf32> to vector<16x48xf32>
    %cst_39 = arith.constant dense<0.000000e+00> : vector<16x48xf32>
    %122 = tpu.matmul %120, %7, %cst_39 {dimension_numbers = #tpu.dot_dimension_numbers<[1], [0], [0], [1], [0, 0, 1, 1], [], []>} : vector<16x32xf32>, vector<32x48xf32>, vector<16x48xf32> -> vector<16x48xf32>
    %123 = arith.addf %121, %122 : vector<16x48xf32>
    %124 = vector.extract_strided_slice %123 {offsets = [0, 32], sizes = [16, 16], strides = [1, 1]} : vector<16x48xf32> to vector<16x16xf32>
    %cst_40 = arith.constant dense<0xFF800000> : vector<16xf32>
    %125 = vector.multi_reduction <maximumf>, %124, %cst_40 [1] : vector<16x16xf32> to vector<16xf32>
    %126 = vector.shape_cast %125 : vector<16xf32> to vector<16x1xf32>
    %127 = vector.broadcast %126 : vector<16x1xf32> to vector<16x16xf32>
    %128 = arith.subf %124, %127 : vector<16x16xf32>
    %129 = math.exp %128 : vector<16x16xf32>
    %cst_41 = arith.constant dense<0.000000e+00> : vector<16xf32>
    %130 = vector.multi_reduction <add>, %129, %cst_41 [1] : vector<16x16xf32> to vector<16xf32>
    %131 = vector.shape_cast %130 : vector<16xf32> to vector<16x1xf32>
    %132 = math.log %131 : vector<16x1xf32>
    %133 = vector.broadcast %132 : vector<16x1xf32> to vector<16x16xf32>
    %134 = arith.subf %128, %133 : vector<16x16xf32>
    %c0_42 = arith.constant 0 : index
    %c112 = arith.constant 112 : index
    %135 = vector.load %arg6[%c0_42, %c112] : memref<16x128xf32, #tpu.memory_space<vmem>>, vector<16x16xf32>
    tpu.vector_store %arg6[%c0_42, %c112], %134 {strides = array<i32>} : memref<16x128xf32, #tpu.memory_space<vmem>>, vector<16x16xf32>,
    %136 = vector.extract_strided_slice %123 {offsets = [0, 0], sizes = [16, 32], strides = [1, 1]} : vector<16x48xf32> to vector<16x32xf32>
    %c0_43 = arith.constant 0 : index
    %c0_44 = arith.constant 0 : index
    %137 = vector.load %arg7[%c0_43, %c0_44] : memref<16x32xf32, #tpu.memory_space<vmem>>, vector<16x32xf32>
    tpu.vector_store %arg7[%c0_43, %c0_44], %136 {strides = array<i32>} : memref<16x32xf32, #tpu.memory_space<vmem>>, vector<16x32xf32>,
    return
  }
  func.func @transform_0(%arg0: i32) -> (i32, i32, i32) {
    %c0_i32 = arith.constant 0 : i32
    %c0_i32_0 = arith.constant 0 : i32
    %c0_i32_1 = arith.constant 0 : i32
    return %arg0, %c0_i32, %c0_i32_0 : i32, i32, i32
  }
  func.func @transform_1(%arg0: i32) -> (i32, i32) {
    %c0_i32 = arith.constant 0 : i32
    %c0_i32_0 = arith.constant 0 : i32
    return %arg0, %c0_i32 : i32, i32
  }
  func.func @transform_2(%arg0: i32) -> (i32, i32) {
    %c0_i32 = arith.constant 0 : i32
    %c0_i32_0 = arith.constant 0 : i32
    %c0_i32_1 = arith.constant 0 : i32
    return %c0_i32, %c0_i32_0 : i32, i32
  }
  func.func @transform_3(%arg0: i32) -> (i32, i32) {
    %c0_i32 = arith.constant 0 : i32
    %c0_i32_0 = arith.constant 0 : i32
    %c0_i32_1 = arith.constant 0 : i32
    return %c0_i32, %c0_i32_0 : i32, i32
  }
  func.func @transform_4(%arg0: i32) -> (i32, i32) {
    %c0_i32 = arith.constant 0 : i32
    %c0_i32_0 = arith.constant 0 : i32
    %c0_i32_1 = arith.constant 0 : i32
    return %c0_i32, %c0_i32_0 : i32, i32
  }
  func.func @transform_5(%arg0: i32) -> (i32, i32) {
    %c0_i32 = arith.constant 0 : i32
    %c0_i32_0 = arith.constant 0 : i32
    return %arg0, %c0_i32 : i32, i32
  }
  func.func @transform_6(%arg0: i32) -> (i32, i32) {
    %c0_i32 = arith.constant 0 : i32
    %c0_i32_0 = arith.constant 0 : i32
    return %arg0, %c0_i32 : i32, i32
  }
}

</mosaic_0001>

<bundles_post_ra>
// kernel: tpu_custom_call.1
= control target key start
LH: loop header
LB: loop body
LE: loop exit
PB: predicated region body
PF: predicated region fallthrough
CT: control target
= control target key end

     0   :  { %12 = vsyncpa [#allocation3], 0  ;;  %vm49_vm0 = vcmask 130048   ;;  %s2143_s0 = inlined_call_operand.vmem [shape: f32[1,128,16], index: 0, kind: input, shape index: {}]   ;;  %s2144_s1 = inlined_call_operand.vmem [shape: f32[16,32], index: 1, kind: input, shape index: {}]   ;;  %s2145_s2 = inlined_call_operand.vmem [shape: f32[16,48], index: 2, kind: input, shape index: {}]   ;;  %s2146_s3 = inlined_call_operand.vmem [shape: f32[32,48], index: 3, kind: input, shape index: {}]   ;;  %s2147_s4 = inlined_call_operand.vmem [shape: f32[1,48], index: 4, kind: input, shape index: {}]   ;;  %s2148_s5 = inlined_call_operand.hbm [shape: f32[16,128], index: 5, kind: output, shape index: {0}]   ;;  %s2149_s6 = inlined_call_operand.hbm [shape: f32[16,32], index: 6, kind: output, shape index: {1}]  }
   0x1   :  { %v40_v0 = vld [vmem:[%s2145_s2] sm:$0xff]  ;;  %v41_v1 = vld [vmem:[%s2145_s2 + $0x8] sm:$0xff]  ;;  %v245_v8 = vld [vmem:[%s2146_s3 + $0x10] sm:$0xff] }
   0x2   :  { %v24_v2 = vld [vmem:[%s2143_s0] sm:$0xff]  ;;  %v1498_v3 = vpack.c.bf16 %v41_v1, %v40_v0  ;;  %v244_v5 = vld [vmem:[%s2146_s3 + $0x8] sm:$0xff]  ;;  %v26_v9 = vld [vmem:[%s2143_s0 + $0x10] sm:$0xff] }
   0x3   :  { %1386 = vmatprep.mubr.msk.f32.mxu1 %vm49_vm0, %v24_v2  ;;  %v243_v4 = vld [vmem:[%s2146_s3] sm:$0xff]  ;;  %v25_v7 = vld [vmem:[%s2143_s0 + $0x8] sm:$0xff]  ;;  %v246_v10 = vld [vmem:[%s2146_s3 + $0x18] sm:$0xff] }
   0x4   :  { %v1783_v6 = vpack.c.bf16 %v244_v5, %v243_v4  ;;  %1499 = vmatprep.subr.bf16.mxu1 %v1498_v3  ;;  %v1800_v11 = vpack.c.bf16 %v246_v10, %v245_v8  ;;  %v27_v12 = vld [vmem:[%s2143_s0 + $0x18] sm:$0xff] }
   0x5   :  { %1501 = vmatpush3.bf16.msra.mxu1 %v1498_v3 }
   0x6   :  { %1519 = vmatprep.subr.bf16.mxu0 %v1783_v6  ;;  %1503 = vmatprep.subr.bf16.mxu1 %v1783_v6 }
   0x7   :  { %1521 = vmatpush3.bf16.msra.mxu0 %v1783_v6 }
   0x8   :  { %1387 = vmatmul.mubr.msk.f32.vlgmr.msra.gmra.mrb[0].mxu1 %vm49_vm0, %v25_v7 }
   0x9   :  { %1505 = vmatpush3.bf16.msra.mxu1 %v1783_v6  ;;  %1389 = vmatprep.mubr.msk.f32.mxu1 %vm49_vm0, %v26_v9 }
   0xa   :  { %13 = vsyncpa [#allocation5], 0  ;;  %v28_v13 = vld [vmem:[%s2143_s0 + $0x20] sm:$0xff]  ;;  %1507 = vmatprep.subr.bf16.mxu1 %v1800_v11  ;;  %1523 = vmatprep.subr.bf16.mxu0 %v1800_v11  ;;  %v29_v14 = vld [vmem:[%s2143_s0 + $0x28] sm:$0xff]  ;;  %vm249_vm1 = vcmask 261120   ;;  %vm333_vm2 = vcmask 392448  }
   0xb   :  { %1525 = vmatpush3.bf16.msra.mxu0 %v1800_v11  ;;  %v30_v15 = vld [vmem:[%s2143_s0 + $0x30] sm:$0xff]  ;;  %v31_v16 = vld [vmem:[%s2143_s0 + $0x38] sm:$0xff]  ;;  %v32_v17 = vld [vmem:[%s2143_s0 + $0x40] sm:$0xff]  ;;  %s1722_s3 = smov 112   ;;  %vm499_vm3 = vcmask 261248   ;;  %s1723_s18 = smov 16  }
   0xc   :  { %1390 = vmatmul.mubr.msk.f32.gmra.mrb[2].mxu1 %vm49_vm0, %v27_v12  ;;  %1527 = vmatprep.subr.bf16.mxu0 %v1783_v6  ;;  %v33_v18 = vld [vmem:[%s2143_s0 + $0x48] sm:$0xff]  ;;  %v34_v19 = vld [vmem:[%s2143_s0 + $0x50] sm:$0xff]  ;;  %v35_v20 = vld [vmem:[%s2143_s0 + $0x58] sm:$0xff]  ;;  %vm742_vm4 = vcmask 523648   ;;  %s1724_s19 = smov 32   ;;  %vm868_vm5 = vcmask 654848  }
   0xd   :  { %1392 = vmatprep.mubr.msk.f32.mxu1 %vm49_vm0, %v28_v13  ;;  %1509 = vmatpush3.bf16.msra.mxu1 %v1800_v11  ;;  %v36_v21 = vld [vmem:[%s2143_s0 + $0x60] sm:$0xff]  ;;  %v37_v22 = vld [vmem:[%s2143_s0 + $0x68] sm:$0xff]  ;;  %v38_v23 = vld [vmem:[%s2143_s0 + $0x70] sm:$0xff]  ;;  %s1725_s20 = smov 48   ;;  %vm994_vm6 = vcmask 786048   ;;  %s1726_s21 = smov 64  }
   0xe   :  { %1511 = vmatprep.subr.bf16.mxu1 %v1783_v6  ;;  %v39_v24 = vld [vmem:[%s2143_s0 + $0x78] sm:$0xff]  ;;  %v247_v25 = vld [vmem:[%s2144_s1] sm:$0xff]  ;;  %v248_v26 = vld [vmem:[%s2144_s1 + $0x8] sm:$0xff]  ;;  %s1727_s22 = smov [#allocation4]  }
   0xf   :  { %v1901_v39 = vld [vmem:[%s2147_s4] ss:$0 sm:$0xff]  ;;  %s1721_s4 = smov 96   ;;  %s1268_s23 = sshll.u32 %s1727_s22, 4  ;;  %s1269_s23 = int_to_ptr.vmem [resolvable:$true] %s1268_s23 }
  0x10   :  { %1393 = vmatmul.mubr.msk.f32.gmra.mrb[4].mxu1 %vm49_vm0, %v29_v14  ;;  %s1673_s24 = scalar_lea.vmem %s1269_s23, 256  ;;  %p1678_p1 = scmp.lt.s32.totalorder %s1269_s23, %s1269_s23 }
  0x11   :  { %1395 = vmatprep.mubr.msk.f32.mxu1 %vm49_vm0, %v30_v15  ;;  %p1674_p0 = scmp.ne.s32.totalorder %s1269_s23, %s1673_s24  ;;  %p1679_p2 = scmp.lt.s32.totalorder %s1673_s24, %s1673_s24 }
  0x13   :  { %p1680_p3 = por %p1679_p2, %p1678_p1 }
  0x14   :  { %1396 = vmatmul.mubr.msk.f32.gmra.mrb[6].mxu1 %vm49_vm0, %v31_v16 }
  0x15   :  { %1398 = vmatprep.mubr.msk.f32.mxu1 %vm49_vm0, %v32_v17  ;;  %p1681_p4 = pnand %p1680_p3, %p1674_p0 }
  0x18   :  { %1399 = vmatmul.mubr.msk.f32.gmra.mrb[8].mxu1 %vm49_vm0, %v33_v18 }
  0x19   :  { %1401 = vmatprep.mubr.msk.f32.mxu1 %vm49_vm0, %v34_v19 }
  0x1c   :  { %1402 = vmatmul.mubr.msk.f32.gmra.mrb[10].mxu1 %vm49_vm0, %v35_v20 }
  0x1d   :  { %1404 = vmatprep.mubr.msk.f32.mxu1 %vm49_vm0, %v36_v21 }
  0x20   :  { %1405 = vmatmul.mubr.msk.f32.gmra.mrb[12].mxu1 %vm49_vm0, %v37_v22 }
  0x21   :  { %1407 = vmatprep.mubr.msk.f32.mxu1 %vm49_vm0, %v38_v23 }
  0x24   :  { %1408 = vmatmul.mubr.msk.f32.gmra.mrb[14].mxu1 %vm49_vm0, %v39_v24 }
  0x25   :  { %1418 = vmatprep.mubr.msk.f32.mxu1 %vm249_vm1, %v247_v25 }
  0x28   :  { %1419 = vmatmul.mubr.msk.f32.vlgmr.msra.gmra.mrb[0].mxu1 %vm249_vm1, %v248_v26 }
  0x29   :  { %1513 = vmatpush3.bf16.msra.mxu1 %v1783_v6 }
  0x2a   :  { %1515 = vmatprep.subr.bf16.mxu1 %v1800_v11 }
  0x2d   :  { %1517 = vmatpush3.bf16.msra.mxu1 %v1800_v11 }
  0xe3   :  { %v1874_v27 = vpop.f32.mrb[4].mxu1 }
  0xe4   :  { %v1876_v28 = vpop.f32.mrb[5].mxu1  ;;  %v190_v14 = vadd.f32 %v1874_v27, %v1901_v39 }
  0xe5   :  { %v185_v15 = vadd.f32 %v1901_v39, %v1876_v28 }
  0xe7   :  { %v1878_v29 = vpop.f32.mrb[6].mxu1 }
  0xe8   :  { %v1880_v30 = vpop.f32.mrb[7].mxu1 }
  0xeb   :  { %v1882_v31 = vpop.f32.mrb[8].mxu1 }
  0xec   :  { %v1884_v32 = vpop.f32.mrb[9].mxu1 }
  0xef   :  { %v1886_v33 = vpop.f32.mrb[10].mxu1 }
  0xf0   :  { %v1888_v34 = vpop.f32.mrb[11].mxu1 }
  0xf3   :  { %v1890_v35 = vpop.f32.mrb[12].mxu1 }
  0xf4   :  { %v1892_v36 = vpop.f32.mrb[13].mxu1 }
  0xf7   :  { %v1894_v37 = vpop.f32.mrb[14].mxu1 }
  0xf8   :  { %v1896_v38 = vpop.f32.mrb[15].mxu1 }
  0xfb   :  { %v1420_v40 = vpop.f32.mrb[0].mxu1 }
  0xfc   :  { %v1566_v41 = vadd.f32 %v1420_v40, %v1901_v39  ;;  %v322_v42 = vpop.f32.mrb[1].mxu1 }
  0xfd   :  { %v1567_v43 = vadd.f32 %v1901_v39, %v322_v42 }
  0xfe   :  { %v337_v44 = vsel %vm333_vm2, %v1566_v41, -inf }
  0xff   :  { %338 = vmax.xlane.f32.xlu0 %v337_v44  ;;  %1429 = vmatprep.mubr.msk.f32.mxu1 %vm249_vm1, %v1567_v43  ;;  %v334_v45 = vsel %vm333_vm2, %v1567_v43, -inf }
 0x100   :  { %1430 = vmatmul.mubr.msk.f32.vlgmr.msra.gmra.mrb[2].mxu1 %vm249_vm1, %v1566_v41 }
 0x103   :  { %335 = vmax.xlane.f32.xlu0 %v334_v45 }
 0x18c   :  { %v339_v46 = vpop.xlane.xlu0 %338 }
 0x18d   :  { %v341_v47 = vsub.f32 %v1566_v41, %v339_v46 }
 0x18f   :  { %v344_v48 = vmul.f32 1.442695, %v341_v47 }
 0x190   :  { %v336_v49 = vpop.xlane.xlu0 %335 }
 0x191   :  { %1609 = vpow2.f32 %v344_v48  ;;  %v340_v50 = vsub.f32 %v1567_v43, %v336_v49 }
 0x193   :  { %v342_v51 = vmul.f32 1.442695, %v340_v50 }
 0x195   :  { %1611 = vpow2.f32 %v342_v51 }
 0x19b   :  { %v1610_v52 = vpop.eup %1609 }
 0x19c   :  { %350 = vrot.lane.b32.xlu1 %v1610_v52, %s1721_s4 }
 0x19f   :  { %v1612_v53 = vpop.eup %1611 }
 0x1a0   :  { %348 = vrot.lane.b32.xlu1 %v1612_v53, %s1721_s4 }
 0x1d3   :  { %v1431_v54 = vpop.f32.mrb[2].mxu1 }
 0x1d4   :  { %v1568_v55 = vadd.f32 %v1431_v54, %v1901_v39  ;;  %v448_v56 = vpop.f32.mrb[3].mxu1 }
 0x1d5   :  { %v1569_v57 = vadd.f32 %v1901_v39, %v448_v56  ;;  %v195_v56 = vadd.f32 %v1901_v39, %v1880_v30 }
 0x1d6   :  { %v462_v58 = vsel %vm333_vm2, %v1568_v55, -inf }
 0x1d7   :  { %1440 = vmatprep.mubr.msk.f32.mxu0 %vm249_vm1, %v1569_v57  ;;  %463 = vmax.xlane.f32.xlu1 %v462_v58  ;;  %v459_v59 = vsel %vm333_vm2, %v1569_v57, -inf }
 0x1d8   :  { %1441 = vmatmul.mubr.msk.f32.vlgmr.msra.gmra.mrb[0].mxu0 %vm249_vm1, %v1568_v55  ;;  %460 = vmax.xlane.f32.xlu0 %v459_v59 }
 0x1d9   :  { %1529 = vmatpush3.bf16.msra.mxu0 %v1783_v6 }
 0x1da   :  { %1531 = vmatprep.subr.bf16.mxu0 %v1800_v11 }
 0x1dd   :  { %1533 = vmatpush3.bf16.msra.mxu0 %v1800_v11 }
 0x1de   :  { %1535 = vmatprep.subr.bf16.mxu0 %v1783_v6 }
 0x20e   :  { %v351_v60 = vpop.permute.xlu1 %350 }
 0x20f   :  { %v357_v61 = vsel %vm49_vm0, %v351_v60, 0.0 }
 0x210   :  { %358 = vadd.xlane.f32.xlu1 %v357_v61 }
 0x212   :  { %v349_v62 = vpop.permute.xlu1 %348 }
 0x213   :  { %v354_v63 = vsel %vm49_vm0, %v349_v62, 0.0 }
 0x214   :  { %355 = vadd.xlane.f32.xlu0 %v354_v63 }
 0x264   :  { %v464_v0 = vpop.xlane.xlu1 %463 }
 0x265   :  { %v1923_v1 = vsub.f32 %v1568_v55, %v464_v0  ;;  %v461_v2 = vpop.xlane.xlu0 %460  ;;  %v200_v55 = vadd.f32 %v1878_v29, %v1901_v39 }
 0x266   :  { %v1925_v3 = vsub.f32 %v1569_v57, %v461_v2 }
 0x267   :  { %v469_v4 = vmul.f32 1.442695, %v1923_v1 }
 0x268   :  { %v467_v5 = vmul.f32 1.442695, %v1925_v3 }
 0x269   :  { %1613 = vpow2.f32 %v469_v4 }
 0x26a   :  { %1615 = vpow2.f32 %v467_v5 }
 0x273   :  { %v1614_v7 = vpop.eup %1613 }
 0x274   :  { %475 = vrot.lane.b32.xlu1 %v1614_v7, %s1721_s4  ;;  %v1616_v8 = vpop.eup %1615 }
 0x278   :  { %473 = vrot.lane.b32.xlu1 %v1616_v8, %s1721_s4 }
 0x29d   :  { %v359_v9 = vpop.xlane.xlu1 %358 }
 0x29e   :  { %1617 = vlog2.f32 %v359_v9 }
 0x2a1   :  { %v356_v10 = vpop.xlane.xlu0 %355 }
 0x2a2   :  { %1619 = vlog2.f32 %v356_v10 }
 0x2a8   :  { %v1618_v12 = vpop.eup %1617 }
 0x2a9   :  { %v363_v13 = vmul.f32 0.6931472, %v1618_v12 }
 0x2ab   :  { %v1442_v16 = vpop.f32.mrb[0].mxu0  ;;  %v365_v17 = vsub.f32 %v341_v47, %v363_v13 }
 0x2ac   :  { %v1620_v18 = vpop.eup %1619  ;;  %v584_v19 = vadd.f32 %v1442_v16, %v190_v14  ;;  %v574_v20 = vpop.f32.mrb[1].mxu0 }
 0x2ad   :  { %v361_v21 = vmul.f32 0.6931472, %v1620_v18  ;;  %v583_v22 = vadd.f32 %v574_v20, %v185_v15  ;;  %370 = vrot.lane.b32.xlu0 %v365_v17, %s1721_s4  ;;  %v210_v20 = vadd.f32 %v1882_v31, %v1901_v39 }
 0x2ae   :  { %v588_v23 = vsel %vm333_vm2, %v584_v19, -inf }
 0x2af   :  { %589 = vmax.xlane.f32.xlu1 %v588_v23  ;;  %1451 = vmatprep.mubr.msk.f32.mxu0 %vm249_vm1, %v583_v22  ;;  %v364_v24 = vsub.f32 %v340_v50, %v361_v21  ;;  %v585_v25 = vsel %vm333_vm2, %v583_v22, -inf  ;;  %v205_v21 = vadd.f32 %v1901_v39, %v1884_v32 }
 0x2b0   :  { %1452 = vmatmul.mubr.msk.f32.vlgmr.msra.gmra.mrb[2].mxu0 %vm249_vm1, %v584_v19 }
 0x2b1   :  { %368 = vrot.lane.b32.xlu0 %v364_v24, %s1721_s4  ;;  %1537 = vmatpush3.bf16.msra.mxu0 %v1783_v6 }
 0x2b2   :  { %1539 = vmatprep.subr.bf16.mxu0 %v1800_v11 }
 0x2b5   :  { %1541 = vmatpush3.bf16.msra.mxu0 %v1800_v11 }
 0x2b6   :  { %1543 = vmatprep.subr.bf16.mxu0 %v1783_v6 }
 0x2d0   :  { %586 = vmax.xlane.f32.xlu0 %v585_v25 }
 0x2e6   :  { %v476_v26 = vpop.permute.xlu1 %475 }
 0x2e7   :  { %v482_v27 = vsel %vm49_vm0, %v476_v26, 0.0 }
 0x2e8   :  { %483 = vadd.xlane.f32.xlu1 %v482_v27 }
 0x2ea   :  { %v474_v28 = vpop.permute.xlu1 %473 }
 0x2eb   :  { %v479_v40 = vsel %vm49_vm0, %v474_v28, 0.0 }
 0x2ec   :  { %480 = vadd.xlane.f32.xlu0 %v479_v40 }
 0x31f   :  { %v371_v41 = vpop.permute.xlu0 %370 }
 0x320   :  { %375 = vst.msk [vmem:[#allocation2 + $0x8] sm:$0xff] %vm49_vm0, %v371_v41 }
 0x323   :  { %v369_v42 = vpop.permute.xlu0 %368 }
 0x324   :  { %374 = vst.msk [vmem:[#allocation2] sm:$0xff] %vm49_vm0, %v369_v42 }
 0x33c   :  { %v590_v43 = vpop.xlane.xlu1 %589 }
 0x33d   :  { %v1949_v44 = vsub.f32 %v584_v19, %v590_v43 }
 0x33f   :  { %v595_v45 = vmul.f32 1.442695, %v1949_v44 }
 0x341   :  { %1621 = vpow2.f32 %v595_v45 }
 0x34b   :  { %v1622_v46 = vpop.eup %1621 }
 0x34c   :  { %601 = vrot.lane.b32.xlu1 %v1622_v46, %s1721_s4  ;;  %v220_v46 = vadd.f32 %v1886_v33, %v1901_v39 }
 0x35d   :  { %v587_v47 = vpop.xlane.xlu0 %586 }
 0x35e   :  { %v1953_v48 = vsub.f32 %v583_v22, %v587_v47  ;;  %v215_v47 = vadd.f32 %v1901_v39, %v1888_v34  ;;  %v230_v34 = vadd.f32 %v1890_v35, %v1901_v39 }
 0x360   :  { %v593_v49 = vmul.f32 1.442695, %v1953_v48 }
 0x362   :  { %1623 = vpow2.f32 %v593_v49 }
 0x36c   :  { %v1624_v50 = vpop.eup %1623 }
 0x36d   :  { %599 = vrot.lane.b32.xlu1 %v1624_v50, %s1721_s4 }
 0x375   :  { %v484_v51 = vpop.xlane.xlu1 %483 }
 0x376   :  { %1625 = vlog2.f32 %v484_v51 }
 0x379   :  { %v481_v52 = vpop.xlane.xlu0 %480 }
 0x37a   :  { %1627 = vlog2.f32 %v481_v52 }
 0x380   :  { %v1626_v53 = vpop.eup %1625 }
 0x381   :  { %v488_v54 = vmul.f32 0.6931472, %v1626_v53  ;;  %v225_v53 = vadd.f32 %v1901_v39, %v1892_v36 }
 0x383   :  { %v1453_v57 = vpop.f32.mrb[2].mxu0  ;;  %v490_v58 = vsub.f32 %v1923_v1, %v488_v54 }
 0x384   :  { %v1628_v59 = vpop.eup %1627  ;;  %v701_v60 = vadd.f32 %v1453_v57, %v200_v55  ;;  %v691_v61 = vpop.f32.mrb[3].mxu0 }
 0x385   :  { %v486_v62 = vmul.f32 0.6931472, %v1628_v59  ;;  %v700_v63 = vadd.f32 %v691_v61, %v195_v56  ;;  %495 = vrot.lane.b32.xlu0 %v490_v58, %s1722_s3  ;;  %v240_v58 = vadd.f32 %v1894_v37, %v1901_v39 }
 0x386   :  { %v705_v29 = vsel %vm333_vm2, %v701_v60, -inf }
 0x387   :  { %1462 = vmatprep.mubr.msk.f32.mxu0 %vm249_vm1, %v700_v63  ;;  %v489_v0 = vsub.f32 %v1925_v3, %v486_v62  ;;  %v702_v30 = vsel %vm333_vm2, %v700_v63, -inf }
 0x388   :  { %1463 = vmatmul.mubr.msk.f32.vlgmr.msra.gmra.mrb[4].mxu0 %vm249_vm1, %v701_v60 }
 0x389   :  { %493 = vrot.lane.b32.xlu0 %v489_v0, %s1722_s3  ;;  %1545 = vmatpush3.bf16.msra.mxu0 %v1783_v6 }
 0x38a   :  { %1547 = vmatprep.subr.bf16.mxu0 %v1800_v11 }
 0x38d   :  { %1549 = vmatpush3.bf16.msra.mxu0 %v1800_v11 }
 0x38e   :  { %1551 = vmatprep.subr.bf16.mxu0 %v1783_v6 }
 0x3a8   :  { %706 = vmax.xlane.f32.xlu0 %v705_v29 }
 0x3ac   :  { %703 = vmax.xlane.f32.xlu0 %v702_v30 }
 0x3be   :  { %v602_v1 = vpop.permute.xlu1 %601 }
 0x3bf   :  { %v608_v2 = vsel %vm49_vm0, %v602_v1, 0.0 }
 0x3c0   :  { %609 = vadd.xlane.f32.xlu1 %v608_v2 }
 0x3df   :  { %v600_v3 = vpop.permute.xlu1 %599 }
 0x3e0   :  { %v605_v4 = vsel %vm49_vm0, %v600_v3, 0.0 }
 0x3e1   :  { %606 = vadd.xlane.f32.xlu0 %v605_v4 }
 0x3f7   :  { %v496_v5 = vpop.permute.xlu0 %495 }
 0x3f8   :  { %501 = vst.msk [vmem:[#allocation2 + $0x8] sm:$0xff] %vm499_vm3, %v496_v5 }
 0x3fb   :  { %v494_v7 = vpop.permute.xlu0 %493 }
 0x3fc   :  { %500 = vst.msk [vmem:[#allocation2] sm:$0xff] %vm499_vm3, %v494_v7 }
 0x435   :  { %v707_v8 = vpop.xlane.xlu0 %706 }
 0x436   :  { %v1973_v9 = vsub.f32 %v701_v60, %v707_v8  ;;  %v235_v60 = vadd.f32 %v1901_v39, %v1896_v38 }
 0x438   :  { %v712_v10 = vmul.f32 1.442695, %v1973_v9 }
 0x439   :  { %v704_v12 = vpop.xlane.xlu0 %703 }
 0x43a   :  { %1629 = vpow2.f32 %v712_v10  ;;  %v1976_v13 = vsub.f32 %v700_v63, %v704_v12 }
 0x43c   :  { %v710_v14 = vmul.f32 1.442695, %v1976_v13 }
 0x43e   :  { %1631 = vpow2.f32 %v710_v14 }
 0x444   :  { %v1630_v15 = vpop.eup %1629 }
 0x445   :  { %718 = vrot.lane.b32.xlu1 %v1630_v15, %s1721_s4 }
 0x448   :  { %v1632_v16 = vpop.eup %1631 }
 0x449   :  { %716 = vrot.lane.b32.xlu0 %v1632_v16, %s1721_s4 }
 0x44d   :  { %v610_v17 = vpop.xlane.xlu1 %609 }
 0x44e   :  { %1633 = vlog2.f32 %v610_v17 }
 0x458   :  { %v1634_v18 = vpop.eup %1633 }
 0x459   :  { %v614_v19 = vmul.f32 0.6931472, %v1634_v18 }
 0x45b   :  { %v616_v22 = vsub.f32 %v1949_v44, %v614_v19  ;;  %v1464_v23 = vpop.f32.mrb[4].mxu0 }
 0x45c   :  { %v1986_v24 = vadd.f32 %v1464_v23, %v210_v20  ;;  %v817_v25 = vpop.f32.mrb[5].mxu0 }
 0x45d   :  { %618 = vst.msk [vmem:[#allocation2 + $0x8] sm:$0xff] %vm333_vm2, %v616_v22  ;;  %v1989_v26 = vadd.f32 %v817_v25, %v205_v21 }
 0x45e   :  { %v831_v31 = vsel %vm333_vm2, %v1986_v24, -inf }
 0x45f   :  { %1473 = vmatprep.mubr.msk.f32.mxu0 %vm249_vm1, %v1989_v26  ;;  %v828_v32 = vsel %vm333_vm2, %v1989_v26, -inf }
 0x460   :  { %1474 = vmatmul.mubr.msk.f32.vlgmr.msra.gmra.mrb[6].mxu0 %vm249_vm1, %v1986_v24 }
 0x461   :  { %1553 = vmatpush3.bf16.msra.mxu0 %v1783_v6 }
 0x462   :  { %1555 = vmatprep.subr.bf16.mxu0 %v1800_v11 }
 0x465   :  { %1557 = vmatpush3.bf16.msra.mxu0 %v1800_v11 }
 0x466   :  { %1559 = vmatprep.subr.bf16.mxu0 %v1783_v6 }
 0x468   :  { %832 = vmax.xlane.f32.xlu0 %v831_v31 }
 0x46c   :  { %829 = vmax.xlane.f32.xlu0 %v828_v32 }
 0x46e   :  { %v607_v27 = vpop.xlane.xlu0 %606 }
 0x46f   :  { %1635 = vlog2.f32 %v607_v27 }
 0x479   :  { %v1636_v28 = vpop.eup %1635 }
 0x47a   :  { %v612_v40 = vmul.f32 0.6931472, %v1636_v28 }
 0x47c   :  { %v615_v41 = vsub.f32 %v1953_v48, %v612_v40 }
 0x47e   :  { %617 = vst.msk [vmem:[#allocation2] sm:$0xff] %vm333_vm2, %v615_v41 }
 0x4b7   :  { %v719_v42 = vpop.permute.xlu1 %718 }
 0x4b8   :  { %v725_v43 = vsel %vm49_vm0, %v719_v42, 0.0 }
 0x4b9   :  { %726 = vadd.xlane.f32.xlu0 %v725_v43 }
 0x4bb   :  { %v717_v44 = vpop.permute.xlu0 %716 }
 0x4bc   :  { %v722_v45 = vsel %vm49_vm0, %v717_v44, 0.0 }
 0x4bd   :  { %723 = vadd.xlane.f32.xlu1 %v722_v45 }
 0x4f5   :  { %v833_v35 = vpop.xlane.xlu0 %832 }
 0x4f6   :  { %v2058_v39 = vsub.f32 %v1986_v24, %v833_v35 }
 0x4f8   :  { %v838_v3 = vmul.f32 1.442695, %v2058_v39 }
 0x4f9   :  { %v830_v36 = vpop.xlane.xlu0 %829 }
 0x4fa   :  { %v2055_v38 = vsub.f32 %v1989_v26, %v830_v36 }
 0x4fc   :  { %v836_v1 = vmul.f32 1.442695, %v2055_v38 }
 0x533   :  { %v1475_v49 = vpop.f32.mrb[6].mxu0 }
 0x534   :  { %v2011_v50 = vadd.f32 %v1475_v49, %v220_v46  ;;  %v943_v48 = vpop.f32.mrb[7].mxu0 }
 0x535   :  { %v2013_v51 = vadd.f32 %v943_v48, %v215_v47 }
 0x536   :  { %v957_v52 = vsel %vm333_vm2, %v2011_v50, -inf }
 0x537   :  { %1484 = vmatprep.mubr.msk.f32.mxu0 %vm249_vm1, %v2013_v51  ;;  %958 = vmax.xlane.f32.xlu0 %v957_v52  ;;  %v954_v33 = vsel %vm333_vm2, %v2013_v51, -inf }
 0x538   :  { %1485 = vmatmul.mubr.msk.f32.vlgmr.msra.gmra.mrb[8].mxu0 %vm249_vm1, %v2011_v50 }
 0x539   :  { %1561 = vmatpush3.bf16.msra.mxu0 %v1783_v6 }
 0x53a   :  { %1563 = vmatprep.subr.bf16.mxu0 %v1800_v11 }
 0x53b   :  { %955 = vmax.xlane.f32.xlu0 %v954_v33 }
 0x53d   :  { %1565 = vmatpush3.bf16.msra.mxu0 %v1800_v11 }
 0x546   :  { %v727_v59 = vpop.xlane.xlu0 %726 }
 0x547   :  { %1637 = vlog2.f32 %v727_v59 }
 0x54a   :  { %v724_v30 = vpop.xlane.xlu1 %723 }
 0x54b   :  { %1639 = vlog2.f32 %v724_v30 }
 0x54c   :  { %1641 = vpow2.f32 %v836_v1 }
 0x54d   :  { %1643 = vpow2.f32 %v838_v3 }
 0x551   :  { %v1638_v2 = vpop.eup %1637 }
 0x552   :  { %v731_v4 = vmul.f32 0.6931472, %v1638_v2 }
 0x554   :  { %v733_v7 = vsub.f32 %v1973_v9, %v731_v4 }
 0x555   :  { %v1640_v5 = vpop.eup %1639 }
 0x556   :  { %v729_v8 = vmul.f32 0.6931472, %v1640_v5  ;;  %v1642_v10 = vpop.eup %1641 }
 0x557   :  { %v1644_v14 = vpop.eup %1643 }
 0x558   :  { %v732_v12 = vsub.f32 %v1976_v13, %v729_v8 }
 0x5c4   :  { %v959_v15 = vpop.xlane.xlu0 %958 }
 0x5c5   :  { %v2079_v41 = vsub.f32 %v2011_v50, %v959_v15 }
 0x5c7   :  { %v964_v44 = vmul.f32 1.442695, %v2079_v41 }
 0x5c8   :  { %v956_v16 = vpop.xlane.xlu0 %955 }
 0x5c9   :  { %v2068_v13 = vsub.f32 %v2013_v51, %v956_v16 }
 0x5cb   :  { %v962_v26 = vmul.f32 1.442695, %v2068_v13 }
 0x5cd   :  { %1645 = vpow2.f32 %v962_v26 }
 0x5d7   :  { %v1646_v27 = vpop.eup %1645 }
 0x60b   :  { %v1486_v54 = vpop.f32.mrb[8].mxu0 }
 0x60c   :  { %v2030_v55 = vadd.f32 %v1486_v54, %v230_v34  ;;  %v1069_v56 = vpop.f32.mrb[9].mxu0 }
 0x60d   :  { %v2032_v57 = vadd.f32 %v1069_v56, %v225_v53 }
 0x60e   :  { %v1083_v6 = vsel %vm333_vm2, %v2030_v55, -inf }
 0x60f   :  { %1495 = vmatprep.mubr.msk.f32.mxu0 %vm249_vm1, %v2032_v57  ;;  %1084 = vmax.xlane.f32.xlu0 %v1083_v6  ;;  %v1080_v11 = vsel %vm333_vm2, %v2032_v57, -inf }
 0x610   :  { %1496 = vmatmul.mubr.msk.f32.vlgmr.msra.gmra.mrb[10].mxu0 %vm249_vm1, %v2030_v55 }
 0x613   :  { %1081 = vmax.xlane.f32.xlu0 %v1080_v11 }
 0x69c   :  { %v1085_v17 = vpop.xlane.xlu0 %1084 }
 0x69d   :  { %v2082_v42 = vsub.f32 %v2030_v55, %v1085_v17 }
 0x69f   :  { %v1090_v46 = vmul.f32 1.442695, %v2082_v42 }
 0x6a0   :  { %v1082_v18 = vpop.xlane.xlu0 %1081 }
 0x6a1   :  { %v2073_v31 = vsub.f32 %v2032_v57, %v1082_v18 }
 0x6a3   :  { %v1088_v32 = vmul.f32 1.442695, %v2073_v31 }
 0x6a5   :  { %1647 = vpow2.f32 %v1088_v32 }
 0x6af   :  { %v1648_v28 = vpop.eup %1647 }
 0x6e3   :  { %v1497_v61 = vpop.f32.mrb[10].mxu0 }
 0x6e4   :  { %v2046_v62 = vadd.f32 %v1497_v61, %v240_v58  ;;  %v1195_v63 = vpop.f32.mrb[11].mxu0 }
 0x6e5   :  { %v1204_v0 = vadd.f32 %v1195_v63, %v235_v60 }
 0x6e6   :  { %1250 = vst.msk [vmem:[#allocation4 + $0x8] sm:$0xff] %vm249_vm1, %v2046_v62  ;;  %v1209_v29 = vsel %vm333_vm2, %v2046_v62, -inf }
 0x6e7   :  { %1249 = vst.msk [vmem:[#allocation4] sm:$0xff] %vm249_vm1, %v1204_v0  ;;  %1210 = vmax.xlane.f32.xlu1 %v1209_v29  ;;  %v1206_v37 = vsel %vm333_vm2, %v1204_v0, -inf }
 0x6e8   :  { %1207 = vmax.xlane.f32.xlu0 %v1206_v37 }
 0x6f8   :  { %738 = vrot.lane.b32.xlu1 %v733_v7, %s1723_s18 }
 0x6fc   :  { %842 = vrot.lane.b32.xlu1 %v1642_v10, %s1721_s4 }
 0x6fe   :  { %736 = vrot.lane.b32.xlu0 %v732_v12, %s1723_s18 }
 0x700   :  { %844 = vrot.lane.b32.xlu1 %v1644_v14, %s1721_s4 }
 0x774   :  { %v1211_v19 = vpop.xlane.xlu1 %1210 }
 0x775   :  { %v1208_v20 = vpop.xlane.xlu0 %1207  ;;  %v2089_v47 = vsub.f32 %v2046_v62, %v1211_v19 }
 0x776   :  { %v2085_v45 = vsub.f32 %v1204_v0, %v1208_v20 }
 0x777   :  { %v1216_v51 = vmul.f32 1.442695, %v2089_v47 }
 0x778   :  { %v739_v9 = vpop.permute.xlu1 %738  ;;  %v1214_v49 = vmul.f32 1.442695, %v2085_v45 }
 0x779   :  { %744 = vst.msk [vmem:[#allocation2 + $0x8] sm:$0xff] %vm742_vm4, %v739_v9  ;;  %v737_v21 = vpop.permute.xlu0 %736 }
 0x77a   :  { %743 = vst.msk [vmem:[#allocation2] sm:$0xff] %vm742_vm4, %v737_v21 }
 0x77c   :  { %v843_v22 = vpop.permute.xlu1 %842 }
 0x77d   :  { %v848_v23 = vsel %vm49_vm0, %v843_v22, 0.0 }
 0x77e   :  { %849 = vadd.xlane.f32.xlu0 %v848_v23 }
 0x780   :  { %v845_v24 = vpop.permute.xlu1 %844 }
 0x781   :  { %v851_v25 = vsel %vm49_vm0, %v845_v24, 0.0 }
 0x782   :  { %852 = vadd.xlane.f32.xlu1 %v851_v25 }
 0x793   :  { %968 = vrot.lane.b32.xlu1 %v1646_v27, %s1721_s4 }
 0x797   :  { %1094 = vrot.lane.b32.xlu1 %v1648_v28, %s1721_s4 }
 0x80b   :  { %v850_v40 = vpop.xlane.xlu0 %849 }
 0x80c   :  { %1649 = vlog2.f32 %v850_v40 }
 0x80f   :  { %v853_v43 = vpop.xlane.xlu1 %852 }
 0x810   :  { %1651 = vlog2.f32 %v853_v43 }
 0x811   :  { %1653 = vpow2.f32 %v964_v44 }
 0x812   :  { %1655 = vpow2.f32 %v1090_v46 }
 0x813   :  { %1657 = vpow2.f32 %v1214_v49  ;;  %v969_v6 = vpop.permute.xlu1 %968 }
 0x814   :  { %1659 = vpow2.f32 %v1216_v51  ;;  %v974_v11 = vsel %vm49_vm0, %v969_v6, 0.0 }
 0x816   :  { %v1650_v50 = vpop.eup %1649 }
 0x817   :  { %v855_v48 = vmul.f32 0.6931472, %v1650_v50  ;;  %v1095_v35 = vpop.permute.xlu1 %1094 }
 0x818   :  { %v1100_v30 = vsel %vm49_vm0, %v1095_v35, 0.0 }
 0x819   :  { %v858_v52 = vsub.f32 %v2055_v38, %v855_v48 }
 0x81a   :  { %v1652_v33 = vpop.eup %1651 }
 0x81b   :  { %v857_v34 = vmul.f32 0.6931472, %v1652_v33  ;;  %862 = vrot.lane.b32.xlu0 %v858_v52, %s1724_s19  ;;  %v1654_v54 = vpop.eup %1653 }
 0x81c   :  { %v1656_v55 = vpop.eup %1655 }
 0x81d   :  { %v859_v53 = vsub.f32 %v2058_v39, %v857_v34  ;;  %v1658_v56 = vpop.eup %1657 }
 0x81e   :  { %v1660_v57 = vpop.eup %1659 }
 0x81f   :  { %864 = vrot.lane.b32.xlu1 %v859_v53, %s1724_s19  ;;  %970 = vrot.lane.b32.xlu0 %v1654_v54, %s1721_s4 }
 0x823   :  { %1220 = vrot.lane.b32.xlu1 %v1658_v56, %s1721_s4  ;;  %1096 = vrot.lane.b32.xlu0 %v1656_v55, %s1721_s4 }
 0x827   :  { %1222 = vrot.lane.b32.xlu0 %v1660_v57, %s1721_s4 }
 0x846   :  { %975 = vadd.xlane.f32.xlu0 %v974_v11 }
 0x88d   :  { %v863_v36 = vpop.permute.xlu0 %862 }
 0x88e   :  { %869 = vst.msk [vmem:[#allocation2] sm:$0xff] %vm868_vm5, %v863_v36 }
 0x891   :  { %v865_v58 = vpop.permute.xlu1 %864  ;;  %v971_v59 = vpop.permute.xlu0 %970 }
 0x892   :  { %870 = vst.msk [vmem:[#allocation2 + $0x8] sm:$0xff] %vm868_vm5, %v865_v58  ;;  %v977_v60 = vsel %vm49_vm0, %v971_v59, 0.0 }
 0x893   :  { %978 = vadd.xlane.f32.xlu1 %v977_v60 }
 0x895   :  { %v1097_v61 = vpop.permute.xlu0 %1096  ;;  %v1221_v38 = vpop.permute.xlu1 %1220 }
 0x896   :  { %v1226_v39 = vsel %vm49_vm0, %v1221_v38, 0.0  ;;  %v1103_v7 = vsel %vm49_vm0, %v1097_v61, 0.0 }
 0x899   :  { %v1223_v62 = vpop.permute.xlu0 %1222 }
 0x89a   :  { %v1229_v1 = vsel %vm49_vm0, %v1223_v62, 0.0 }
 0x8d3   :  { %v976_v63 = vpop.xlane.xlu0 %975 }
 0x8d4   :  { %1661 = vlog2.f32 %v976_v63 }
 0x8de   :  { %v1662_v0 = vpop.eup %1661 }
 0x8df   :  { %v981_v29 = vmul.f32 0.6931472, %v1662_v0 }
 0x8e1   :  { %v984_v37 = vsub.f32 %v2068_v13, %v981_v29 }
 0x8e3   :  { %988 = vrot.lane.b32.xlu0 %v984_v37, %s1725_s20 }
 0x902   :  { %1101 = vadd.xlane.f32.xlu0 %v1100_v30 }
 0x906   :  { %1227 = vadd.xlane.f32.xlu0 %v1226_v39 }
 0x90a   :  { %1230 = vadd.xlane.f32.xlu0 %v1229_v1 }
 0x920   :  { %v979_v2 = vpop.xlane.xlu1 %978 }
 0x921   :  { %1663 = vlog2.f32 %v979_v2 }
 0x92b   :  { %v1664_v3 = vpop.eup %1663 }
 0x92c   :  { %v983_v4 = vmul.f32 0.6931472, %v1664_v3 }
 0x92e   :  { %v985_v5 = vsub.f32 %v2079_v41, %v983_v4 }
 0x930   :  { %990 = vrot.lane.b32.xlu1 %v985_v5, %s1725_s20 }
 0x954   :  { %1104 = vadd.xlane.f32.xlu1 %v1103_v7 }
 0x955   :  { %v989_v8 = vpop.permute.xlu0 %988 }
 0x956   :  { %995 = vst.msk [vmem:[#allocation2] sm:$0xff] %vm994_vm6, %v989_v8 }
 0x98f   :  { %v1102_v10 = vpop.xlane.xlu0 %1101 }
 0x990   :  { %1665 = vlog2.f32 %v1102_v10 }
 0x993   :  { %v1228_v17 = vpop.xlane.xlu0 %1227 }
 0x994   :  { %1667 = vlog2.f32 %v1228_v17 }
 0x997   :  { %v1231_v19 = vpop.xlane.xlu0 %1230 }
 0x99a   :  { %v1666_v12 = vpop.eup %1665 }
 0x99b   :  { %v1107_v14 = vmul.f32 0.6931472, %v1666_v12 }
 0x99d   :  { %v1110_v15 = vsub.f32 %v2073_v31, %v1107_v14 }
 0x99e   :  { %v1668_v20 = vpop.eup %1667 }
 0x99f   :  { %1114 = vrot.lane.b32.xlu0 %v1110_v15, %s1726_s21 }
 0x9a2   :  { %v991_v16 = vpop.permute.xlu1 %990 }
 0x9a3   :  { %996 = vst.msk [vmem:[#allocation2 + $0x8] sm:$0xff] %vm994_vm6, %v991_v16 }
 0x9e1   :  { %v1105_v18 = vpop.xlane.xlu1 %1104 }
 0x9e2   :  { %1669 = vlog2.f32 %v1105_v18 }
 0x9e3   :  { %1671 = vlog2.f32 %v1231_v19 }
 0x9ec   :  { %v1670_v9 = vpop.eup %1669 }
 0x9ed   :  { %v1109_v21 = vmul.f32 0.6931472, %v1670_v9 }
 0x9ee   :  { %1684 = shalt.err (!%p1681_p4)
}
 0x9ef   :  { %s1685_s27 = scalar_lea.hbm %s2149_s6, 256 }
 0x9f0   :  { %p1686_p5 = scmp.ne.s32.totalorder %s2149_s6, %s1685_s27  ;;  %p1689_p6 = scmp.lt.u32.totalorder %s1685_s27, %s2149_s6 }
 0x9f2   :  { %p1691_p7 = pnand %p1689_p6, %p1686_p5 }
 0x9f4   :  { %1694 = shalt.err (!%p1691_p7)
}
 0x9f5   :  { %s1728_s7 = smov 128   ;;  %s1729_s8 = smov 8   ;;  %v1233_v22 = vmul.f32 0.6931472, %v1668_v20  ;;  %v1111_v23 = vsub.f32 %v2082_v42, %v1109_v21  ;;  %v1672_v13 = vpop.eup %1671  ;;  %vm1120_vm7 = vcmask 917248   ;;  %vm1246_vm8 = vcmask 1048448  }
 0x9f6   :  { %1274 = dma.vmem_to_hbm [thread:$0]  %s1269_s23, 256, %s2149_s6, [#allocation5], %s1728_s7, %s1728_s7, %s1729_s8   ;;  %v1235_v24 = vmul.f32 0.6931472, %v1672_v13 }
 0x9f7   :  { %1116 = vrot.lane.b32.xlu1 %v1111_v23, %s1726_s21  ;;  %v1236_v25 = vsub.f32 %v2085_v45, %v1233_v22  ;;  %s1730_s11 = smov 80   ;;  %s1731_s6 = smov [#allocation2]  }
 0x9f8   :  { %v1237_v26 = vsub.f32 %v2089_v47, %v1235_v24  ;;  %s1256_s12 = sshll.u32 %s1731_s6, 4  ;;  %s1257_s12 = int_to_ptr.vmem [resolvable:$true] %s1256_s12 }
 0x9f9   :  { %s1695_s13 = scalar_lea.vmem %s1257_s12, 256  ;;  %p1700_p9 = scmp.lt.s32.totalorder %s1257_s12, %s1257_s12 }
 0x9fa   :  { %p1696_p8 = scmp.ne.s32.totalorder %s1257_s12, %s1695_s13  ;;  %p1701_p10 = scmp.lt.s32.totalorder %s1695_s13, %s1695_s13 }
 0x9fb   :  { %1240 = vrot.lane.b32.xlu1 %v1236_v25, %s1730_s11 }
 0x9fc   :  { %p1702_p11 = por %p1701_p10, %p1700_p9 }
 0x9fe   :  { %p1703_p12 = pnand %p1702_p11, %p1696_p8 }
 0x9ff   :  { %1242 = vrot.lane.b32.xlu1 %v1237_v26, %s1730_s11 }
 0xa11   :  { %v1115_v31 = vpop.permute.xlu0 %1114 }
 0xa12   :  { %1121 = vst.msk [vmem:[#allocation2] sm:$0xff] %vm1120_vm7, %v1115_v31 }
 0xa69   :  { %v1117_v32 = vpop.permute.xlu1 %1116 }
 0xa6a   :  { %1122 = vst.msk [vmem:[#allocation2 + $0x8] sm:$0xff] %vm1120_vm7, %v1117_v32 }
 0xa6d   :  { %v1241_v27 = vpop.permute.xlu1 %1240 }
 0xa6e   :  { %1247 = vst.msk [vmem:[#allocation2] sm:$0xff] %vm1246_vm8, %v1241_v27 }
 0xa71   :  { %v1243_v28 = vpop.permute.xlu1 %1242 }
 0xa72   :  { %1248 = vst.msk [vmem:[#allocation2 + $0x8] sm:$0xff] %vm1246_vm8, %v1243_v28 }
 0xa73   :  { %1706 = shalt.err (!%p1703_p12)
}
 0xa74   :  { %s1707_s16 = scalar_lea.hbm %s2148_s5, 256 }
 0xa75   :  { %p1708_p13 = scmp.ne.s32.totalorder %s2148_s5, %s1707_s16  ;;  %p1711_p0 = scmp.lt.u32.totalorder %s1707_s16, %s2148_s5 }
 0xa77   :  { %p1713_p1 = pnand %p1711_p0, %p1708_p13 }
 0xa79   :  { %1716 = shalt.err (!%p1713_p1)
}
 0xa7a   :  { %1262 = dma.vmem_to_hbm [thread:$0]  %s1257_s12, 256, %s2148_s5, [#allocation3], %s1728_s7, %s1728_s7, %s1729_s8  }
 0xa7b   :  { %1717 = dma.done.wait [#allocation3], 256  }
 0xa7c   :  { %1718 = vsyncadd [#allocation3], 4294967040 }
 0xa7d   :  { %1719 = dma.done.wait [#allocation5], 256  }
 0xa7e   :  { %1720 = vsyncadd [#allocation5], 4294967040 }
 0xa7f   :  { %1281 = vsyncpa [#allocation3], 1 }
 0xa80   :  { %1282 = vsyncpa [#allocation5], 1 }

</bundles_post_ra>
